<compile_context>
chip_gen: v7x
topology: tpu7x:2x2x1
jax: 0.10.0
libtpu: 0.0.40
codegen_flags: <defaults>
</compile_context>

<pallas_src>
import functools

import jax
import jax.numpy as jnp
from jax.experimental import pallas as pl
from jax.experimental.pallas import tpu as pltpu


def _conv_softmax_kernel(p_ref, w_ref, o_ref, *, n, h_out, w_out):
    """Single-step kernel: conv-as-matmul + softmax over W + NCHW-layout store.

    p_ref: (N*M, K_pad) bf16   im2col patches, M = H_out*W_out.  Rows are ordered
                               (n major, h, w minor) -- MUST match _im2col.
    w_ref: (K_pad, C_out) bf16 flattened conv weight (zero rows pad K 27 -> 32).
    o_ref: (N, C_out, M)  bf16 softmax(conv(x)), C_out-major / (h, w)-minor,
                               i.e. NCHW after a free reshape in the wrapper.
    """
    c_out = w_ref.shape[1]
    m = h_out * w_out

    # One fused-batch MXU matmul over the whole batch, f32 accumulation.
    y = jnp.dot(p_ref[...], w_ref[...],
                preferred_element_type=jnp.float32)          # (N*M, C_out) f32

    # Reinterpret rows as (n, h, w): only splits the sublane-major dim at
    # 8-sublane (tile) granularity -> free.  Softmax over W (axis=2) in f32.
    # NOTE: axis=2 being "W" relies on the (n, h, w)-major row ordering produced
    # by _im2col's reshape; keep the two in sync.
    yr = y.reshape(n, h_out, w_out, c_out)
    mx = jnp.max(yr, axis=2, keepdims=True)                  # (n, h, 1, C_out)
    e = jnp.exp(yr - mx)                                     # (n, h, w, C_out)
    s = jnp.sum(e, axis=2, keepdims=True)                    # (n, h, 1, C_out)
    inv = pl.reciprocal(s, approx=True)                      # EUP slot, ~free
    sm = (e * inv).reshape(n, m, c_out)                      # (n, M, C_out) f32

    # (C_out, C_out) identity built from 2-D broadcasted iotas (the supported
    # in-kernel iota form) for the MXU-based transpose below.
    eye = (jax.lax.broadcasted_iota(jnp.int32, (c_out, c_out), 0)
           == jax.lax.broadcasted_iota(jnp.int32, (c_out, c_out), 1)
           ).astype(jnp.float32)

    # Per-image (M, C_out) -> (C_out, M) transpose done as an identity NT matmul
    # on the idle MXU (guaranteed dot_general lowering; avoids a standalone
    # relayout/transpose and the wrapper-side NHWC->NCHW XLA transpose).
    for b in range(n):                                       # static unroll, tiny N
        t = jax.lax.dot_general(eye, sm[b], (((1,), (1,)), ((), ())),
                                preferred_element_type=jnp.float32)  # (C_out, M)
        o_ref[b] = t.astype(o_ref.dtype)


def _im2col(x_nchw, kh, kw, stride, pad, k_pad):
    """Plain-JAX glue (fuses under jit): 3x3 / stride-2 patches.

    Returns (N, H_out*W_out, K_pad) bf16 with last-dim ordering
    (c_in major, kh, kw minor), matching weight.reshape(C_out, C_in*KH*KW),
    and row ordering (h major, w minor) per image -- the kernel's softmax
    reshape depends on this ordering.
    """
    n, c, h, w = x_nchw.shape
    h_out = (h + 2 * pad - kh) // stride + 1
    w_out = (w + 2 * pad - kw) // stride + 1
    x = jnp.transpose(x_nchw, (0, 2, 3, 1))                       # NHWC
    xp = jnp.pad(x, ((0, 0), (pad, pad), (pad, pad), (0, 0)))
    cols = []
    for i in range(kh):
        for j in range(kw):
            cols.append(
                xp[:, i:i + stride * (h_out - 1) + 1:stride,
                      j:j + stride * (w_out - 1) + 1:stride, :])  # (N,H_out,W_out,C)
    patches = jnp.stack(cols, axis=-1)                 # (N, H_out, W_out, C, KH*KW)
    k = c * kh * kw
    patches = patches.reshape(n, h_out * w_out, k)     # (c, kh, kw) minor
    if k_pad > k:
        patches = jnp.pad(patches, ((0, 0), (0, 0), (0, k_pad - k)))
    return patches, h_out, w_out


@jax.jit
def aten_softmax_replace_forward(x_nchw, weight):
    """x_nchw: (N, 3, H, W) bf16; weight: (64, 3, 3, 3) bf16 -> (N, 64, H_out, W_out) bf16."""
    c_out, c_in, kh, kw = weight.shape
    k = c_in * kh * kw
    k_pad = -(-k // 8) * 8                              # 27 -> 32 (see scaling note above)

    patches, h_out, w_out = _im2col(x_nchw, kh, kw, stride=2, pad=1, k_pad=k_pad)
    n = x_nchw.shape[0]
    m = h_out * w_out

    p2 = patches.reshape(n * m, k_pad)                  # fused-batch LHS
    w_flat = weight.reshape(c_out, k).T                 # (K, C_out)
    w_flat = jnp.pad(w_flat, ((0, k_pad - k), (0, 0)))  # (K_pad, C_out), zero rows

    out = pl.pallas_call(
        functools.partial(_conv_softmax_kernel, n=n, h_out=h_out, w_out=w_out),
        out_shape=jax.ShapeDtypeStruct((n, c_out, m), x_nchw.dtype),
        in_specs=[
            pl.BlockSpec(memory_space=pltpu.MemorySpace.VMEM),   # whole patches slab
            pl.BlockSpec(memory_space=pltpu.MemorySpace.VMEM),   # whole weight
        ],
        out_specs=pl.BlockSpec(memory_space=pltpu.MemorySpace.VMEM),
    )(p2, w_flat)

    # Kernel already emitted NCHW-compatible (N, C_out, H_out*W_out); this
    # reshape is a free row-major metadata change (no transpose dispatch).
    return out.reshape(n, c_out, h_out, w_out)


def _reference(x_nchw, weight):
    # Pure-JAX reference (conv + softmax over last dim), f32 compute.
    y = jax.lax.conv_general_dilated(
        x_nchw.astype(jnp.float32), weight.astype(jnp.float32),
        window_strides=(2, 2), padding=((1, 1), (1, 1)),
        dimension_numbers=("NCHW", "OIHW", "NCHW"))
    return jax.nn.softmax(y, axis=-1)


if __name__ == "__main__":
    key = jax.random.PRNGKey(0)
    kx, kw_key = jax.random.split(key)

    # Small shapes consistent with the module: N=2, C_in=3, H=W=16 -> out (2, 64, 8, 8)
    x = jax.random.uniform(kx, (2, 3, 16, 16), dtype=jnp.float32).astype(jnp.bfloat16)
    weight = (jax.random.normal(kw_key, (64, 3, 3, 3), dtype=jnp.float32) * 0.1).astype(jnp.bfloat16)

    out = aten_softmax_replace_forward(x, weight)
    out = jax.block_until_ready(out)

    ref = _reference(x, weight)
    assert out.shape == ref.shape == (2, 64, 8, 8), (out.shape, ref.shape)
    assert jnp.allclose(out.astype(jnp.float32), ref, atol=3e-2, rtol=3e-2), "mismatch vs reference"

    print("KERNEL_OK")
</pallas_src>

<mosaic_0001>
module attributes {stable_mosaic.version = 11 : i64} {
  func.func @_conv_softmax_kernel(%arg0: memref<128x32xbf16, #tpu.memory_space<vmem>>, %arg1: memref<32x64xbf16, #tpu.memory_space<vmem>>, %arg2: memref<2x64x64xbf16, #tpu.memory_space<vmem>>) attributes {dimension_semantics = [], scalar_prefetch = 0 : i64, scratch_operands = 0 : i64, tpu.core_type = #tpu.core_type<tc>} {
    %c0 = arith.constant 0 : index
    %c0_0 = arith.constant 0 : index
    %0 = vector.load %arg0[%c0, %c0_0] : memref<128x32xbf16, #tpu.memory_space<vmem>>, vector<128x32xbf16>
    %c0_1 = arith.constant 0 : index
    %c0_2 = arith.constant 0 : index
    %1 = vector.load %arg1[%c0_1, %c0_2] : memref<32x64xbf16, #tpu.memory_space<vmem>>, vector<32x64xbf16>
    %cst = arith.constant dense<0.000000e+00> : vector<128x64xf32>
    %2 = tpu.matmul %0, %1, %cst {dimension_numbers = #tpu.dot_dimension_numbers<[1], [0], [0], [1], [0, 0, 1, 1], [], []>} : vector<128x32xbf16>, vector<32x64xbf16>, vector<128x64xf32> -> vector<128x64xf32>
    %3 = vector.shape_cast %2 : vector<128x64xf32> to vector<2x8x8x64xf32>
    %cst_3 = arith.constant dense<0xFF800000> : vector<2x8x64xf32>
    %4 = vector.multi_reduction <maximumf>, %3, %cst_3 [2] : vector<2x8x8x64xf32> to vector<2x8x64xf32>
    %5 = vector.shape_cast %4 : vector<2x8x64xf32> to vector<2x8x1x64xf32>
    %6 = vector.broadcast %5 : vector<2x8x1x64xf32> to vector<2x8x8x64xf32>
    %7 = arith.subf %3, %6 : vector<2x8x8x64xf32>
    %8 = math.exp %7 : vector<2x8x8x64xf32>
    %cst_4 = arith.constant dense<0.000000e+00> : vector<2x8x64xf32>
    %9 = vector.multi_reduction <add>, %8, %cst_4 [2] : vector<2x8x8x64xf32> to vector<2x8x64xf32>
    %10 = vector.shape_cast %9 : vector<2x8x64xf32> to vector<2x8x1x64xf32>
    %11 = tpu.reciprocal %10 {approx = true} : vector<2x8x1x64xf32> -> vector<2x8x1x64xf32>
    %12 = vector.broadcast %11 : vector<2x8x1x64xf32> to vector<2x8x8x64xf32>
    %13 = arith.mulf %8, %12 : vector<2x8x8x64xf32>
    %14 = vector.shape_cast %13 : vector<2x8x8x64xf32> to vector<2x64x64xf32>
    %15 = tpu.iota {dimensions = array<i32: 0>} : vector<64x64xi32>
    %16 = tpu.iota {dimensions = array<i32: 1>} : vector<64x64xi32>
    %17 = arith.cmpi eq, %15, %16 : vector<64x64xi32>
    %18 = arith.extui %17 : vector<64x64xi1> to vector<64x64xi32>
    %19 = arith.sitofp %18 : vector<64x64xi32> to vector<64x64xf32>
    %20 = vector.extract_strided_slice %14 {offsets = [0, 0, 0], sizes = [1, 64, 64], strides = [1, 1, 1]} : vector<2x64x64xf32> to vector<1x64x64xf32>
    %21 = vector.shape_cast %20 : vector<1x64x64xf32> to vector<64x64xf32>
    %cst_5 = arith.constant dense<0.000000e+00> : vector<64x64xf32>
    %22 = tpu.matmul %19, %21, %cst_5 {dimension_numbers = #tpu.dot_dimension_numbers<[1], [1], [0], [0], [0, 0, 1, 0], [], []>} : vector<64x64xf32>, vector<64x64xf32>, vector<64x64xf32> -> vector<64x64xf32>
    %23 = arith.truncf %22 : vector<64x64xf32> to vector<64x64xbf16>
    %c0_6 = arith.constant 0 : index
    %c0_7 = arith.constant 0 : index
    %c0_8 = arith.constant 0 : index
    %24 = vector.load %arg2[%c0_6, %c0_7, %c0_8] : memref<2x64x64xbf16, #tpu.memory_space<vmem>>, vector<1x64x64xbf16>
    %25 = vector.shape_cast %24 : vector<1x64x64xbf16> to vector<64x64xbf16>
    %26 = vector.shape_cast %23 : vector<64x64xbf16> to vector<1x64x64xbf16>
    tpu.vector_store %arg2[%c0_6, %c0_7, %c0_8], %26 {strides = array<i32>} : memref<2x64x64xbf16, #tpu.memory_space<vmem>>, vector<1x64x64xbf16>,
    %27 = vector.extract_strided_slice %14 {offsets = [1, 0, 0], sizes = [1, 64, 64], strides = [1, 1, 1]} : vector<2x64x64xf32> to vector<1x64x64xf32>
    %28 = vector.shape_cast %27 : vector<1x64x64xf32> to vector<64x64xf32>
    %cst_9 = arith.constant dense<0.000000e+00> : vector<64x64xf32>
    %29 = tpu.matmul %19, %28, %cst_9 {dimension_numbers = #tpu.dot_dimension_numbers<[1], [1], [0], [0], [0, 0, 1, 0], [], []>} : vector<64x64xf32>, vector<64x64xf32>, vector<64x64xf32> -> vector<64x64xf32>
    %30 = arith.truncf %29 : vector<64x64xf32> to vector<64x64xbf16>
    %c1 = arith.constant 1 : index
    %c0_10 = arith.constant 0 : index
    %c0_11 = arith.constant 0 : index
    %31 = vector.load %arg2[%c1, %c0_10, %c0_11] : memref<2x64x64xbf16, #tpu.memory_space<vmem>>, vector<1x64x64xbf16>
    %32 = vector.shape_cast %31 : vector<1x64x64xbf16> to vector<64x64xbf16>
    %33 = vector.shape_cast %30 : vector<64x64xbf16> to vector<1x64x64xbf16>
    tpu.vector_store %arg2[%c1, %c0_10, %c0_11], %33 {strides = array<i32>} : memref<2x64x64xbf16, #tpu.memory_space<vmem>>, vector<1x64x64xbf16>,
    return
  }
}

</mosaic_0001>

<bundles_post_ra>
// kernel: aten_softmax_replace_forward.1
= control target key start
LH: loop header
LB: loop body
LE: loop exit
PB: predicated region body
PF: predicated region fallthrough
CT: control target
= control target key end

     0   :  { %vm84_vm0 = vcmask 261120   ;;  %v511_v10 = vlaneseq  ;;  %vm206_vm2 = vcmask 523264   ;;  %v1253_v13 = vmov 0.0   ;;  %s1613_s1 = inlined_call_operand.vmem [shape: bf16[32,64], index: 1, kind: input, shape index: {}]   ;;  %s1614_s0 = inlined_call_operand.vmem [shape: bf16[128,32], index: 0, kind: input, shape index: {}]   ;;  %s1615_s2 = inlined_call_operand.vmem [shape: bf16[2,64,64], index: 2, kind: output, shape index: {}]  }
   0x1   :  { %v1179_v0 = vld [vmem:[%s1613_s1] sm:$0xff]   ;;  %v1180_v1 = vld [vmem:[%s1613_s1 + $0x8] sm:$0xff]   ;;  %v1183_v4 = vld [vmem:[%s1614_s0 + $0x10] sm:$0xff]   ;;  %vm731_vm11 = vcmask 519168  }
   0x2   :  { %1054 = vmatprep.subr.bf16.mxu0 %v1179_v0  ;;  %v1181_v2 = vld [vmem:[%s1614_s0] sm:$0xff]   ;;  %v1182_v3 = vld [vmem:[%s1614_s0 + $0x8] sm:$0xff]   ;;  %v1184_v5 = vld [vmem:[%s1614_s0 + $0x18] sm:$0xff]   ;;  %v1307_v11 = vshrl.u32 %v511_v10, 7  ;;  %v1309_v12 = vand.u32 127, %v511_v10 }
   0x3   :  { %1055 = vmatpush3.bf16.msra.mxu0 %v1179_v0  ;;  %1058 = vmatprep.mubr.msk.bf16.mxu0 %vm84_vm0, %v1181_v2  ;;  %v1185_v6 = vld [vmem:[%s1614_s0 + $0x20] sm:$0xff]   ;;  %v1186_v7 = vld [vmem:[%s1614_s0 + $0x28] sm:$0xff]   ;;  %v1187_v8 = vld [vmem:[%s1614_s0 + $0x30] sm:$0xff]  }
   0x4   :  { %1056 = vmatprep.subr.bf16.mxu0 %v1180_v1  ;;  %v1188_v9 = vld [vmem:[%s1614_s0 + $0x38] sm:$0xff]   ;;  %vm522_vm1 = vcmp.eq.s32.totalorder %v1307_v11, %v1309_v12  ;;  %vm1467_vm3 = vmpackc.low %vm206_vm2, %vm206_vm2 }
   0x5   :  { %v932_v14 = vsel %vm522_vm1, 1.0, %v1253_v13 }
   0x6   :  { %1090 = vmatprep.mubr.msk.f32.mxu1 %vm206_vm2, %v932_v14 }
   0x7   :  { %1057 = vmatpush3.bf16.msra.mxu0 %v1180_v1 }
   0xa   :  { %1059 = vmatmul.mubr.msk.bf16.vlgmr.msra.gmra.mrb[0].mxu0 %vm84_vm0, %v1182_v3 }
   0xb   :  { %1062 = vmatprep.mubr.msk.bf16.mxu0 %vm84_vm0, %v1183_v4 }
  0x12   :  { %1063 = vmatmul.mubr.msk.bf16.gmra.mrb[4].mxu0 %vm84_vm0, %v1184_v5 }
  0x13   :  { %1066 = vmatprep.mubr.msk.bf16.mxu0 %vm84_vm0, %v1185_v6 }
  0x1a   :  { %1067 = vmatmul.mubr.msk.bf16.gmra.mrb[8].mxu0 %vm84_vm0, %v1186_v7 }
  0x1b   :  { %1070 = vmatprep.mubr.msk.bf16.mxu0 %vm84_vm0, %v1187_v8 }
  0x22   :  { %1071 = vmatmul.mubr.msk.bf16.gmra.mrb[12].mxu0 %vm84_vm0, %v1188_v9 }
  0x23   :  { %1118 = vmatprep.mubr.msk.f32.mxu0 %vm206_vm2, %v932_v14 }
  0xdd   :  { %v1060_v15 = vpop.f32.mrb[0].mxu0 }
  0xde   :  { %v221_v16 = vsel %vm206_vm2, %v1060_v15, -inf  ;;  %v143_v17 = vpop.f32.mrb[1].mxu0 }
  0xdf   :  { %v222_v18 = vrot.slane %v221_v16, 4  ;;  %v207_v19 = vsel %vm206_vm2, %v143_v17, -inf  ;;  %v1061_v20 = vpop.f32.mrb[2].mxu0 }
  0xe0   :  { %v208_v21 = vrot.slane %v207_v19, 4  ;;  %v228_v22 = vsel %vm206_vm2, %v1061_v20, -inf  ;;  %v146_v23 = vpop.f32.mrb[3].mxu0 }
  0xe1   :  { %v223_v24 = vmax.f32 %v221_v16, %v222_v18  ;;  %v229_v25 = vrot.slane %v228_v22, 4  ;;  %v214_v26 = vsel %vm206_vm2, %v146_v23, -inf }
  0xe2   :  { %v209_v27 = vmax.f32 %v207_v19, %v208_v21  ;;  %v215_v28 = vrot.slane %v214_v26, 4 }
  0xe3   :  { %v224_v29 = vrot.slane %v223_v24, 2  ;;  %v230_v30 = vmax.f32 %v228_v22, %v229_v25 }
  0xe4   :  { %v210_v31 = vrot.slane %v209_v27, 2  ;;  %v216_v32 = vmax.f32 %v214_v26, %v215_v28 }
  0xe5   :  { %v225_v33 = vmax.f32 %v223_v24, %v224_v29  ;;  %v231_v34 = vrot.slane %v230_v30, 2  ;;  %v1320_v35 = vpop.f32.mrb[4].mxu0 }
  0xe6   :  { %v211_v36 = vmax.f32 %v209_v27, %v210_v31  ;;  %v217_v37 = vrot.slane %v216_v32, 2  ;;  %v249_v38 = vsel %vm206_vm2, %v1320_v35, -inf  ;;  %v1324_v39 = vpop.f32.mrb[5].mxu0 }
  0xe7   :  { %v226_v40 = vrot.slane %v225_v33, 1  ;;  %v232_v41 = vmax.f32 %v230_v30, %v231_v34  ;;  %v250_v42 = vrot.slane %v249_v38, 4  ;;  %v235_v43 = vsel %vm206_vm2, %v1324_v39, -inf  ;;  %v1328_v44 = vpop.f32.mrb[6].mxu0 }
  0xe8   :  { %v212_v45 = vrot.slane %v211_v36, 1  ;;  %v218_v46 = vmax.f32 %v216_v32, %v217_v37  ;;  %v236_v47 = vrot.slane %v235_v43, 4  ;;  %v256_v48 = vsel %vm206_vm2, %v1328_v44, -inf  ;;  %v1332_v49 = vpop.f32.mrb[7].mxu0 }
  0xe9   :  { %v227_v50 = vmax.f32 %v225_v33, %v226_v40  ;;  %v233_v51 = vrot.slane %v232_v41, 1  ;;  %v251_v52 = vmax.f32 %v249_v38, %v250_v42  ;;  %v257_v53 = vrot.slane %v256_v48, 4 }
  0xea   :  { %v213_v54 = vmax.f32 %v211_v36, %v212_v45  ;;  %v219_v55 = vrot.slane %v218_v46, 1  ;;  %v237_v56 = vmax.f32 %v235_v43, %v236_v47  ;;  %v242_v57 = vsel %vm206_vm2, %v1332_v49, -inf }
  0xeb   :  { %v321_v58 = vsub.f32 %v1060_v15, %v227_v50  ;;  %v234_v59 = vmax.f32 %v232_v41, %v233_v51  ;;  %v252_v60 = vrot.slane %v251_v52, 2  ;;  %v258_v61 = vmax.f32 %v256_v48, %v257_v53 }
  0xec   :  { %v319_v62 = vsub.f32 %v143_v17, %v213_v54  ;;  %v220_v63 = vmax.f32 %v218_v46, %v219_v55  ;;  %v238_v0 = vrot.slane %v237_v56, 2  ;;  %v243_v1 = vrot.slane %v242_v57, 4 }
  0xed   :  { %v339_v2 = vmul.f32 1.442695, %v321_v58  ;;  %v322_v3 = vsub.f32 %v1061_v20, %v234_v59  ;;  %v253_v4 = vmax.f32 %v251_v52, %v252_v60  ;;  %v259_v5 = vrot.slane %v258_v61, 2  ;;  %v1336_v6 = vpop.f32.mrb[8].mxu0 }
  0xee   :  { %v335_v7 = vmul.f32 1.442695, %v319_v62  ;;  %v320_v8 = vsub.f32 %v146_v23, %v220_v63  ;;  %v239_v9 = vmax.f32 %v237_v56, %v238_v0  ;;  %v244_v10 = vmax.f32 %v242_v57, %v243_v1  ;;  %v1338_v14 = vpop.f32.mrb[9].mxu0 }
  0xef   :  { %1189 = vpow2.f32 %v339_v2  ;;  %v341_v15 = vmul.f32 1.442695, %v322_v3  ;;  %v254_v16 = vrot.slane %v253_v4, 1  ;;  %v260_v18 = vmax.f32 %v258_v61, %v259_v5  ;;  %v1340_v17 = vpop.f32.mrb[10].mxu0 }
  0xf0   :  { %1191 = vpow2.f32 %v335_v7  ;;  %v337_v19 = vmul.f32 1.442695, %v320_v8  ;;  %v240_v21 = vrot.slane %v239_v9, 1  ;;  %v245_v20 = vrot.slane %v244_v10, 2  ;;  %v1342_v22 = vpop.f32.mrb[11].mxu0 }
  0xf1   :  { %1193 = vpow2.f32 %v341_v15  ;;  %v255_v24 = vmax.f32 %v253_v4, %v254_v16  ;;  %v261_v25 = vrot.slane %v260_v18, 1  ;;  %v277_v23 = vsel %vm206_vm2, %v1336_v6, -inf }
  0xf2   :  { %1195 = vpow2.f32 %v337_v19  ;;  %v241_v26 = vmax.f32 %v239_v9, %v240_v21  ;;  %v246_v27 = vmax.f32 %v244_v10, %v245_v20  ;;  %v278_v28 = vrot.slane %v277_v23, 4 }
  0xf3   :  { %v325_v29 = vsub.f32 %v1320_v35, %v255_v24  ;;  %v262_v30 = vmax.f32 %v260_v18, %v261_v25  ;;  %v263_v31 = vsel %vm206_vm2, %v1338_v14, -inf  ;;  %v284_v32 = vsel %vm206_vm2, %v1340_v17, -inf }
  0xf4   :  { %v323_v33 = vsub.f32 %v1324_v39, %v241_v26  ;;  %v247_v34 = vrot.slane %v246_v27, 1  ;;  %v279_v36 = vmax.f32 %v277_v23, %v278_v28  ;;  %v264_v37 = vrot.slane %v263_v31, 4 }
  0xf5   :  { %v347_v38 = vmul.f32 1.442695, %v325_v29  ;;  %v326_v40 = vsub.f32 %v1328_v44, %v262_v30  ;;  %v285_v41 = vrot.slane %v284_v32, 4  ;;  %v270_v42 = vsel %vm206_vm2, %v1342_v22, -inf  ;;  %v1355_v35 = vpop.f32.mrb[12].mxu0 }
  0xf6   :  { %v343_v43 = vmul.f32 1.442695, %v323_v33  ;;  %v248_v45 = vmax.f32 %v246_v27, %v247_v34  ;;  %v280_v46 = vrot.slane %v279_v36, 2  ;;  %v265_v47 = vmax.f32 %v263_v31, %v264_v37  ;;  %v1357_v48 = vpop.f32.mrb[13].mxu0 }
  0xf7   :  { %1197 = vpow2.f32 %v347_v38  ;;  %v349_v39 = vmul.f32 1.442695, %v326_v40  ;;  %v286_v50 = vmax.f32 %v284_v32, %v285_v41  ;;  %v271_v51 = vrot.slane %v270_v42, 4  ;;  %v1359_v52 = vpop.f32.mrb[14].mxu0 }
  0xf8   :  { %1199 = vpow2.f32 %v343_v43  ;;  %v324_v44 = vsub.f32 %v1332_v49, %v248_v45  ;;  %v281_v53 = vmax.f32 %v279_v36, %v280_v46  ;;  %v266_v54 = vrot.slane %v265_v47, 2  ;;  %v1362_v55 = vpop.f32.mrb[15].mxu0 }
  0xf9   :  { %v1364_v56 = vpop.eup %1189  ;;  %1201 = vpow2.f32 %v349_v39  ;;  %v287_v57 = vrot.slane %v286_v50, 2  ;;  %v272_v58 = vmax.f32 %v270_v42, %v271_v51  ;;  %v1368_v59 = vsel %vm206_vm2, %v1355_v35, -inf }
  0xfa   :  { %v1370_v60 = vpop.eup %1191  ;;  %v381_v61 = vsel %vm206_vm2, %v1364_v56, 0.0  ;;  %v345_v62 = vmul.f32 1.442695, %v324_v44  ;;  %v282_v49 = vrot.slane %v281_v53, 1  ;;  %v267_v63 = vmax.f32 %v265_v47, %v266_v54 }
  0xfb   :  { %v1374_v0 = vpop.eup %1193  ;;  %v382_v1 = vrot.slane %v381_v61, 4  ;;  %v367_v2 = vsel %vm206_vm2, %v1370_v60, 0.0  ;;  %v288_v3 = vmax.f32 %v286_v50, %v287_v57  ;;  %v273_v4 = vrot.slane %v272_v58, 2 }
  0xfc   :  { %v1378_v5 = vpop.eup %1195  ;;  %v368_v7 = vrot.slane %v367_v2, 4  ;;  %v388_v8 = vsel %vm206_vm2, %v1374_v0, 0.0  ;;  %1203 = vpow2.f32 %v345_v62  ;;  %v283_v9 = vmax.f32 %v281_v53, %v282_v49 }
  0xfd   :  { %v383_v10 = vadd.f32 %v382_v1, %v381_v61  ;;  %v389_v15 = vrot.slane %v388_v8, 4  ;;  %v374_v16 = vsel %vm206_vm2, %v1378_v5, 0.0  ;;  %v268_v18 = vrot.slane %v267_v63, 1 }
  0xfe   :  { %v369_v19 = vadd.f32 %v368_v7, %v367_v2  ;;  %v375_v21 = vrot.slane %v374_v16, 4  ;;  %v329_v20 = vsub.f32 %v1336_v6, %v283_v9  ;;  %v289_v24 = vrot.slane %v288_v3, 1 }
  0xff   :  { %v384_v25 = vrot.slane %v383_v10, 2  ;;  %v390_v23 = vadd.f32 %v389_v15, %v388_v8  ;;  %v269_v26 = vmax.f32 %v267_v63, %v268_v18  ;;  %v274_v27 = vmax.f32 %v272_v58, %v273_v4 }
 0x100   :  { %v370_v28 = vrot.slane %v369_v19, 2  ;;  %v376_v29 = vadd.f32 %v375_v21, %v374_v16  ;;  %v355_v30 = vmul.f32 1.442695, %v329_v20  ;;  %v290_v31 = vmax.f32 %v288_v3, %v289_v24 }
 0x101   :  { %v1385_v32 = vpop.eup %1197  ;;  %v385_v33 = vadd.f32 %v384_v25, %v383_v10  ;;  %v391_v34 = vrot.slane %v390_v23, 2  ;;  %v327_v36 = vsub.f32 %v1338_v14, %v269_v26  ;;  %v275_v37 = vrot.slane %v274_v27, 1 }
 0x102   :  { %v1388_v38 = vpop.eup %1199  ;;  %v1390_v40 = vadd.f32 %v370_v28, %v369_v19  ;;  %v377_v6 = vrot.slane %v376_v29, 2  ;;  %v409_v41 = vsel %vm206_vm2, %v1385_v32, 0.0  ;;  %1205 = vpow2.f32 %v355_v30 }
 0x103   :  { %v1394_v42 = vpop.eup %1201  ;;  %v386_v43 = vrot.slane %v385_v33, 1  ;;  %v392_v45 = vadd.f32 %v391_v34, %v390_v23  ;;  %v410_v46 = vrot.slane %v409_v41, 4  ;;  %v395_v47 = vsel %vm206_vm2, %v1388_v38, 0.0 }
 0x104   :  { %v1398_v39 = vadd.f32 %v377_v6, %v376_v29  ;;  %v396_v14 = vrot.slane %v395_v47, 4  ;;  %v416_v50 = vsel %vm206_vm2, %v1394_v42, 0.0  ;;  %v351_v51 = vmul.f32 1.442695, %v327_v36 }
 0x105   :  { %v387_v44 = vadd.f32 %v386_v43, %v385_v33  ;;  %v393_v53 = vrot.slane %v392_v45, 1  ;;  %v411_v54 = vadd.f32 %v410_v46, %v409_v41  ;;  %v417_v57 = vrot.slane %v416_v50, 4 }
 0x106   :  { %v1402_v58 = vpop.eup %1203  ;;  %v397_v61 = vadd.f32 %v396_v14, %v395_v47  ;;  %1207 = vpow2.f32 %v351_v51  ;;  %v330_v62 = vsub.f32 %v1340_v17, %v290_v31  ;;  %v276_v49 = vmax.f32 %v274_v27, %v275_v37 }
 0x107   :  { %1209 = vrcp.f32 %v387_v44  ;;  %v394_v63 = vadd.f32 %v393_v53, %v392_v45  ;;  %v412_v1 = vrot.slane %v411_v54, 2  ;;  %v418_v2 = vadd.f32 %v417_v57, %v416_v50 }
 0x108   :  { %v398_v3 = vrot.slane %v397_v61, 2  ;;  %v402_v4 = vsel %vm206_vm2, %v1402_v58, 0.0  ;;  %v357_v7 = vmul.f32 1.442695, %v330_v62  ;;  %v328_v8 = vsub.f32 %v1342_v22, %v276_v49 }
 0x109   :  { %1211 = vrcp.f32 %v394_v63  ;;  %v413_v9 = vadd.f32 %v412_v1, %v411_v54  ;;  %v419_v10 = vrot.slane %v418_v2, 2  ;;  %v403_v15 = vrot.slane %v402_v4, 4 }
 0x10a   :  { %v399_v16 = vadd.f32 %v398_v3, %v397_v61  ;;  %1213 = vpow2.f32 %v357_v7  ;;  %v353_v18 = vmul.f32 1.442695, %v328_v8  ;;  %v306_v17 = vrot.slane %v1368_v59, 4 }
 0x10b   :  { %v414_v19 = vrot.slane %v413_v9, 1  ;;  %v420_v21 = vadd.f32 %v419_v10, %v418_v2  ;;  %v404_v20 = vadd.f32 %v403_v15, %v402_v4  ;;  %v291_v24 = vsel %vm206_vm2, %v1357_v48, -inf }
 0x10c   :  { %v1411_v25 = vpop.eup %1205  ;;  %v400_v23 = vrot.slane %v399_v16, 1  ;;  %1215 = vpow2.f32 %v353_v18  ;;  %v307_v22 = vmax.f32 %v1368_v59, %v306_v17  ;;  %v292_v26 = vrot.slane %v291_v24, 4 }
 0x10d   :  { %v415_v27 = vadd.f32 %v414_v19, %v413_v9  ;;  %v421_v28 = vrot.slane %v420_v21, 1  ;;  %v405_v29 = vrot.slane %v404_v20, 2  ;;  %v437_v30 = vsel %vm206_vm2, %v1411_v25, 0.0 }
 0x10e   :  { %v401_v31 = vadd.f32 %v400_v23, %v399_v16  ;;  %v438_v33 = vrot.slane %v437_v30, 4  ;;  %v308_v34 = vrot.slane %v307_v22, 2  ;;  %v293_v36 = vmax.f32 %v291_v24, %v292_v26 }
 0x10f   :  { %1217 = vrcp.f32 %v415_v27  ;;  %v422_v37 = vadd.f32 %v421_v28, %v420_v21  ;;  %v406_v6 = vadd.f32 %v405_v29, %v404_v20  ;;  %v312_v41 = vsel %vm206_vm2, %v1359_v52, -inf }
 0x110   :  { %v1418_v43 = vpop.eup %1207  ;;  %1219 = vrcp.f32 %v401_v31  ;;  %v439_v59 = vadd.f32 %v438_v33, %v437_v30  ;;  %v309_v45 = vmax.f32 %v307_v22, %v308_v34  ;;  %v294_v46 = vrot.slane %v293_v36, 2 }
 0x111   :  { %v1210_v47 = vpop.eup %1209  ;;  %1221 = vrcp.f32 %v422_v37  ;;  %v407_v14 = vrot.slane %v406_v6, 1  ;;  %v423_v50 = vsel %vm206_vm2, %v1418_v43, 0.0  ;;  %v313_v51 = vrot.slane %v312_v41, 4 }
 0x112   :  { %v440_v44 = vrot.slane %v439_v59, 2  ;;  %v424_v53 = vrot.slane %v423_v50, 4  ;;  %v310_v54 = vrot.slane %v309_v45, 1  ;;  %v295_v57 = vmax.f32 %v293_v36, %v294_v46 }
 0x113   :  { %v1212_v61 = vpop.eup %1211  ;;  %v408_v62 = vadd.f32 %v407_v14, %v406_v6  ;;  %v314_v49 = vmax.f32 %v312_v41, %v313_v51  ;;  %v298_v63 = vsel %vm206_vm2, %v1362_v55, -inf  ;;  %v372_v1 = vrot.slane %v1390_v40, 1 }
 0x114   :  { %v1425_v2 = vpop.eup %1213  ;;  %v441_v3 = vadd.f32 %v440_v44, %v439_v59  ;;  %v425_v4 = vadd.f32 %v424_v53, %v423_v50  ;;  %v311_v7 = vmax.f32 %v309_v45, %v310_v54  ;;  %v296_v8 = vrot.slane %v295_v57, 1 }
 0x115   :  { %1223 = vrcp.f32 %v408_v62  ;;  %v444_v9 = vsel %vm206_vm2, %v1425_v2, 0.0  ;;  %v315_v10 = vrot.slane %v314_v49, 2  ;;  %v299_v15 = vrot.slane %v298_v63, 4 }
 0x116   :  { %v1429_v16 = vpop.eup %1215  ;;  %v442_v18 = vrot.slane %v441_v3, 1  ;;  %v426_v17 = vrot.slane %v425_v4, 2  ;;  %v445_v19 = vrot.slane %v444_v9, 4  ;;  %v333_v21 = vsub.f32 %v1355_v35, %v311_v7 }
 0x117   :  { %v430_v20 = vsel %vm206_vm2, %v1429_v16, 0.0  ;;  %v297_v24 = vmax.f32 %v295_v57, %v296_v8  ;;  %v316_v23 = vmax.f32 %v314_v49, %v315_v10  ;;  %v300_v22 = vmax.f32 %v298_v63, %v299_v15 }
 0x118   :  { %v443_v26 = vadd.f32 %v442_v18, %v441_v3  ;;  %v427_v27 = vadd.f32 %v426_v17, %v425_v4  ;;  %v446_v28 = vadd.f32 %v445_v19, %v444_v9  ;;  %v431_v29 = vrot.slane %v430_v20, 4 }
 0x119   :  { %v1218_v30 = vpop.eup %1217  ;;  %v363_v31 = vmul.f32 1.442695, %v333_v21  ;;  %v331_v33 = vsub.f32 %v1357_v48, %v297_v24  ;;  %v317_v34 = vrot.slane %v316_v23, 1  ;;  %v301_v36 = vrot.slane %v300_v22, 2 }
 0x11a   :  { %v1220_v37 = vpop.eup %1219  ;;  %1225 = vrcp.f32 %v443_v26  ;;  %v428_v6 = vrot.slane %v427_v27, 1  ;;  %v447_v35 = vrot.slane %v446_v28, 2  ;;  %v432_v41 = vadd.f32 %v431_v29, %v430_v20 }
 0x11b   :  { %v1222_v59 = vpop.eup %1221  ;;  %1227 = vpow2.f32 %v363_v31  ;;  %v359_v45 = vmul.f32 1.442695, %v331_v33  ;;  %v318_v46 = vmax.f32 %v316_v23, %v317_v34  ;;  %v302_v14 = vmax.f32 %v300_v22, %v301_v36 }
 0x11c   :  { %v429_v50 = vadd.f32 %v428_v6, %v427_v27  ;;  %v448_v51 = vadd.f32 %v447_v35, %v446_v28  ;;  %v433_v44 = vrot.slane %v432_v41, 2  ;;  %v373_v53 = vadd.f32 %v372_v1, %v1390_v40 }
 0x11d   :  { %1229 = vpow2.f32 %v359_v45  ;;  %v334_v48 = vsub.f32 %v1359_v52, %v318_v46  ;;  %v303_v54 = vrot.slane %v302_v14, 1  ;;  %v379_v57 = vrot.slane %v1398_v39, 1 }
 0x11e   :  { %1231 = vrcp.f32 %v429_v50  ;;  %v449_v62 = vrot.slane %v448_v51, 1  ;;  %v434_v49 = vadd.f32 %v433_v44, %v432_v41  ;;  %v497_v63 = vmul.f32 %v1210_v47, %v1364_v56 }
 0x11f   :  { %v1224_v3 = vpop.eup %1223  ;;  %v365_v4 = vmul.f32 1.442695, %v334_v48  ;;  %v304_v7 = vmax.f32 %v302_v14, %v303_v54  ;;  %v380_v8 = vadd.f32 %v379_v57, %v1398_v39  ;;  %1233 = vrcp.f32 %v373_v53 }
 0x120   :  { %v450_v9 = vadd.f32 %v449_v62, %v448_v51  ;;  %v435_v10 = vrot.slane %v434_v49, 1  ;;  %v498_v40 = vmul.f32 %v1212_v61, %v1374_v0  ;;  %v499_v52 = vmul.f32 %v1220_v37, %v1388_v38 }
 0x121   :  { %1235 = vpow2.f32 %v365_v4  ;;  %v332_v1 = vsub.f32 %v1362_v55, %v304_v7  ;;  %v500_v15 = vmul.f32 %v1224_v3, %v1402_v58  ;;  %v501_v18 = vmul.f32 %v1218_v30, %v1385_v32 }
 0x122   :  { %1237 = vrcp.f32 %v450_v9  ;;  %v436_v56 = vadd.f32 %v435_v10, %v434_v49  ;;  %v1445_v47 = vpack.c.bf16 %v498_v40, %v497_v63  ;;  %v502_v39 = vmul.f32 %v1222_v59, %v1394_v42 }
 0x123   :  { %v361_v17 = vmul.f32 1.442695, %v332_v1  ;;  %1239 = vrcp.f32 %v380_v8  ;;  %v1448_v19 = vpack.c.bf16 %v500_v15, %v499_v52 }
 0x124   :  { %v1226_v0 = vpop.eup %1225  ;;  %1241 = vrcp.f32 %v436_v56  ;;  %v1450_v38 = vpack.c.bf16 %v502_v39, %v501_v18  ;;  %v513_v39 = vadd.s32 8, %v1307_v11 }
 0x125   :  { %v1452_v61 = vpop.eup %1227  ;;  %1243 = vpow2.f32 %v361_v17  ;;  %v505_v41 = vmul.f32 %v1226_v0, %v1411_v25  ;;  %v514_v17 = vadd.s32 16, %v1307_v11 }
 0x126   :  { %v465_v55 = vsel %vm206_vm2, %v1452_v61, 0.0  ;;  %vm523_vm4 = vcmp.eq.s32.totalorder %v513_v39, %v1309_v12 }
 0x127   :  { %v1456_v32 = vpop.eup %1229  ;;  %v466_v58 = vrot.slane %v465_v55, 4  ;;  %vm524_vm5 = vcmp.eq.s32.totalorder %v514_v17, %v1309_v12 }
 0x128   :  { %v1232_v21 = vpop.eup %1231  ;;  %v451_v42 = vsel %vm206_vm2, %v1456_v32, 0.0 }
 0x129   :  { %v1234_v20 = vpop.eup %1233  ;;  %v467_v24 = vadd.f32 %v466_v58, %v465_v55  ;;  %v452_v23 = vrot.slane %v451_v42, 4  ;;  %v933_v55 = vsel %vm523_vm4, 1.0, %v1253_v13  ;;  %v518_v58 = vadd.s32 48, %v1307_v11 }
 0x12a   :  { %v495_v6 = vmul.f32 %v1234_v20, %v1370_v60  ;;  %v503_v60 = vmul.f32 %v1232_v21, %v1418_v43  ;;  %v519_v20 = vadd.s32 56, %v1307_v11 }
 0x12b   :  { %v1236_v22 = vpop.eup %1235  ;;  %v468_v26 = vrot.slane %v467_v24, 2  ;;  %v453_v27 = vadd.f32 %v452_v23, %v451_v42  ;;  %vm528_vm9 = vcmp.eq.s32.totalorder %v518_v58, %v1309_v12 }
 0x12c   :  { %v1238_v28 = vpop.eup %1237  ;;  %v472_v29 = vsel %vm206_vm2, %v1236_v22, 0.0  ;;  %v938_v23 = vsel %vm528_vm9, 1.0, %v1253_v13  ;;  %vm529_vm10 = vcmp.eq.s32.totalorder %v519_v20, %v1309_v12 }
 0x12d   :  { %v1240_v30 = vpop.eup %1239  ;;  %v469_v31 = vadd.f32 %v468_v26, %v467_v24  ;;  %v454_v33 = vrot.slane %v453_v27, 2  ;;  %v473_v34 = vrot.slane %v472_v29, 4  ;;  %v506_v36 = vmul.f32 %v1238_v28, %v1425_v2 }
 0x12e   :  { %v1242_v37 = vpop.eup %1241  ;;  %v496_v35 = vmul.f32 %v1240_v30, %v1378_v5 }
 0x12f   :  { %v1244_v59 = vpop.eup %1243  ;;  %v470_v45 = vrot.slane %v469_v31, 1  ;;  %v455_v46 = vadd.f32 %v454_v33, %v453_v27  ;;  %v474_v14 = vadd.f32 %v473_v34, %v472_v29  ;;  %v504_v51 = vmul.f32 %v1242_v37, %v1429_v16 }
 0x130   :  { %v458_v2 = vsel %vm206_vm2, %v1244_v59, 0.0  ;;  %v1130_v44 = vpack.c.bf16 %v496_v35, %v495_v6  ;;  %v1160_v5 = vpack.c.bf16 %v506_v36, %v505_v41 }
 0x131   :  { %v475_v53 = vrot.slane %v474_v14, 2  ;;  %v459_v25 = vrot.slane %v458_v2, 4  ;;  %v1154_v48 = vpack.c.bf16 %v504_v51, %v503_v60  ;;  %v471_v54 = vadd.f32 %v470_v45, %v469_v31 }
 0x132   :  { %1132 = vmatprep.subr.msk.bf16.mxu1 %vm1467_vm3, %v1130_v44  ;;  %v456_v57 = vrot.slane %v455_v46, 1 }
 0x133   :  { %v476_v62 = vadd.f32 %v475_v53, %v474_v14  ;;  %v460_v49 = vadd.f32 %v459_v25, %v458_v2  ;;  %1135 = vmatpush3.bf16.xpose.msk.msra.mxu1 %vm1467_vm3, %v1130_v44  ;;  %1156 = vmatprep.subr.msk.bf16.mxu0 %vm1467_vm3, %v1154_v48  ;;  %1245 = vrcp.f32 %v471_v54 }
 0x134   :  { %1138 = vmatprep.subr.msk.bf16.mxu1 %vm1467_vm3, %v1445_v47  ;;  %1159 = vmatpush3.bf16.xpose.msk.msra.mxu0 %vm1467_vm3, %v1154_v48  ;;  %v457_v63 = vadd.f32 %v456_v57, %v455_v46 }
 0x135   :  { %v477_v43 = vrot.slane %v476_v62, 1  ;;  %v461_v16 = vrot.slane %v460_v49, 2  ;;  %1162 = vmatprep.subr.msk.bf16.mxu0 %vm1467_vm3, %v1160_v5 }
 0x137   :  { %v478_v3 = vadd.f32 %v477_v43, %v476_v62  ;;  %v462_v4 = vadd.f32 %v461_v16, %v460_v49 }
 0x139   :  { %1247 = vrcp.f32 %v478_v3  ;;  %v463_v7 = vrot.slane %v462_v4, 1 }
 0x13a   :  { %1249 = vrcp.f32 %v457_v63 }
 0x13b   :  { %v464_v8 = vadd.f32 %v463_v7, %v462_v4  ;;  %1141 = vmatpush3.bf16.xpose.msk.msra.mxu1 %vm1467_vm3, %v1445_v47 }
 0x13c   :  { %1144 = vmatprep.subr.msk.bf16.mxu1 %vm1467_vm3, %v1448_v19  ;;  %1165 = vmatpush3.bf16.xpose.msk.msra.mxu0 %vm1467_vm3, %v1160_v5 }
 0x13d   :  { %1251 = vrcp.f32 %v464_v8  ;;  %v1246_v9 = vpop.eup %1245 }
 0x13e   :  { %v509_v40 = vmul.f32 %v1246_v9, %v1452_v61  ;;  %v516_v61 = vadd.s32 32, %v1307_v11 }
 0x140   :  { %vm526_vm7 = vcmp.eq.s32.totalorder %v516_v61, %v1309_v12 }
 0x141   :  { %v936_v42 = vsel %vm526_vm7, 1.0, %v1253_v13 }
 0x143   :  { %v1248_v10 = vpop.eup %1247  ;;  %1147 = vmatpush3.bf16.xpose.msk.msra.mxu1 %vm1467_vm3, %v1448_v19  ;;  %v515_v19 = vadd.s32 24, %v1307_v11 }
 0x144   :  { %1150 = vmatprep.subr.msk.bf16.mxu1 %vm1467_vm3, %v1450_v38  ;;  %v510_v52 = vmul.f32 %v1248_v10, %v1236_v22  ;;  %v1250_v1 = vpop.eup %1249 }
 0x145   :  { %v507_v56 = vmul.f32 %v1250_v1, %v1456_v32  ;;  %vm525_vm6 = vcmp.eq.s32.totalorder %v515_v19, %v1309_v12  ;;  %v517_v32 = vadd.s32 40, %v1307_v11  ;;  %v939_v11 = vsel %vm529_vm10, 1.0, %v1253_v13 }
 0x146   :  { %v1172_v15 = vpack.c.bf16 %v510_v52, %v509_v40  ;;  %v935_v21 = vsel %vm525_vm6, 1.0, %v1253_v13 }
 0x147   :  { %v1252_v18 = vpop.eup %1251  ;;  %vm527_vm8 = vcmp.eq.s32.totalorder %v517_v32, %v1309_v12 }
 0x148   :  { %v508_v47 = vmul.f32 %v1252_v18, %v1244_v59  ;;  %v937_v24 = vsel %vm527_vm8, 1.0, %v1253_v13 }
 0x14a   :  { %v1166_v0 = vpack.c.bf16 %v508_v47, %v507_v56 }
 0x14b   :  { %1153 = vmatpush3.bf16.xpose.msk.msra.mxu1 %vm1467_vm3, %v1450_v38  ;;  %v934_v38 = vsel %vm524_vm5, 1.0, %v1253_v13 }
 0x14c   :  { %1168 = vmatprep.subr.msk.bf16.mxu0 %vm1467_vm3, %v1166_v0 }
 0x14d   :  { %1171 = vmatpush3.bf16.xpose.msk.msra.mxu0 %vm1467_vm3, %v1166_v0 }
 0x14e   :  { %1174 = vmatprep.subr.msk.bf16.mxu0 %vm1467_vm3, %v1172_v15 }
 0x152   :  { %1091 = vmatmul.mubr.msk.f32.vlgmr.msra.gmra.mrb[0].mxu1 %vm206_vm2, %v933_v55 }
 0x153   :  { %1093 = vmatprep.mubr.msk.f32.mxu1 %vm206_vm2, %v934_v38 }
 0x155   :  { %1177 = vmatpush3.bf16.xpose.msk.msra.mxu0 %vm1467_vm3, %v1172_v15 }
 0x156   :  { %1094 = vmatmul.mubr.msk.f32.gmra.mrb[2].mxu1 %vm206_vm2, %v935_v21 }
 0x157   :  { %1096 = vmatprep.mubr.msk.f32.mxu1 %vm206_vm2, %v936_v42 }
 0x15a   :  { %1097 = vmatmul.mubr.msk.f32.gmra.mrb[4].mxu1 %vm206_vm2, %v937_v24 }
 0x15b   :  { %1099 = vmatprep.mubr.msk.f32.mxu1 %vm206_vm2, %v938_v23 }
 0x15c   :  { %1119 = vmatmul.mubr.msk.f32.vlgmr.msra.gmra.mrb[16].mxu0 %vm206_vm2, %v933_v55 }
 0x15d   :  { %1121 = vmatprep.mubr.msk.f32.mxu0 %vm206_vm2, %v934_v38 }
 0x15e   :  { %1100 = vmatmul.mubr.msk.f32.gmra.mrb[6].mxu1 %vm206_vm2, %v939_v11 }
 0x160   :  { %1122 = vmatmul.mubr.msk.f32.gmra.mrb[18].mxu0 %vm206_vm2, %v935_v21 }
 0x161   :  { %1124 = vmatprep.mubr.msk.f32.mxu0 %vm206_vm2, %v936_v42 }
 0x164   :  { %1125 = vmatmul.mubr.msk.f32.gmra.mrb[20].mxu0 %vm206_vm2, %v937_v24 }
 0x165   :  { %1127 = vmatprep.mubr.msk.f32.mxu0 %vm206_vm2, %v938_v23 }
 0x168   :  { %1128 = vmatmul.mubr.msk.f32.gmra.mrb[22].mxu0 %vm206_vm2, %v939_v11 }
 0x225   :  { %v1092_v12 = vpop.f32.mrb[0].mxu1 }
 0x226   :  { %v997_v22 = vpack.c.bf16 %v1092_v12, %v1092_v12  ;;  %v660_v13 = vpop.f32.mrb[1].mxu1 }
 0x227   :  { %v996_v26 = vpack.c.bf16 %v660_v13, %v660_v13 }
 0x228   :  { %733 = vst.msk [vmem:[%s1615_s2 + $0x4] sm:$0xf] %vm731_vm11, %v997_v22 }
 0x229   :  { %732 = vst.msk [vmem:[%s1615_s2] sm:$0xf] %vm731_vm11, %v996_v26  ;;  %v1095_v27 = vpop.f32.mrb[2].mxu1 }
 0x22a   :  { %v999_v28 = vpack.c.bf16 %v1095_v27, %v1095_v27  ;;  %v670_v29 = vpop.f32.mrb[3].mxu1 }
 0x22b   :  { %v998_v30 = vpack.c.bf16 %v670_v29, %v670_v29 }
 0x22c   :  { %735 = vst.msk [vmem:[%s1615_s2 + $0xc] sm:$0xf] %vm731_vm11, %v999_v28 }
 0x22d   :  { %734 = vst.msk [vmem:[%s1615_s2 + $0x8] sm:$0xf] %vm731_vm11, %v998_v30  ;;  %v1098_v31 = vpop.f32.mrb[4].mxu1 }
 0x22e   :  { %v1001_v33 = vpack.c.bf16 %v1098_v31, %v1098_v31  ;;  %v680_v34 = vpop.f32.mrb[5].mxu1 }
 0x22f   :  { %v1120_v36 = vpop.f32.mrb[16].mxu0  ;;  %v1000_v37 = vpack.c.bf16 %v680_v34, %v680_v34 }
 0x230   :  { %v1005_v6 = vpack.c.bf16 %v1120_v36, %v1120_v36  ;;  %v830_v35 = vpop.f32.mrb[17].mxu0  ;;  %737 = vst.msk [vmem:[%s1615_s2 + $0x14] sm:$0xf] %vm731_vm11, %v1001_v33 }
 0x231   :  { %v1004_v41 = vpack.c.bf16 %v830_v35, %v830_v35  ;;  %736 = vst.msk [vmem:[%s1615_s2 + $0x10] sm:$0xf] %vm731_vm11, %v1000_v37  ;;  %v1101_v59 = vpop.f32.mrb[6].mxu1 }
 0x232   :  { %989 = vst.msk [vmem:[%s1615_s2 + $0x24] sm:$0xf] %vm731_vm11, %v1005_v6  ;;  %v1003_v45 = vpack.c.bf16 %v1101_v59, %v1101_v59  ;;  %v690_v46 = vpop.f32.mrb[7].mxu1 }
 0x233   :  { %988 = vst.msk [vmem:[%s1615_s2 + $0x20] sm:$0xf] %vm731_vm11, %v1004_v41  ;;  %v1123_v14 = vpop.f32.mrb[18].mxu0  ;;  %v1002_v50 = vpack.c.bf16 %v690_v46, %v690_v46 }
 0x234   :  { %v1007_v51 = vpack.c.bf16 %v1123_v14, %v1123_v14  ;;  %v840_v2 = vpop.f32.mrb[19].mxu0  ;;  %739 = vst.msk [vmem:[%s1615_s2 + $0x1c] sm:$0xf] %vm731_vm11, %v1003_v45 }
 0x235   :  { %v1006_v44 = vpack.c.bf16 %v840_v2, %v840_v2  ;;  %738 = vst.msk [vmem:[%s1615_s2 + $0x18] sm:$0xf] %vm731_vm11, %v1002_v50 }
 0x236   :  { %991 = vst.msk [vmem:[%s1615_s2 + $0x2c] sm:$0xf] %vm731_vm11, %v1007_v51 }
 0x237   :  { %990 = vst.msk [vmem:[%s1615_s2 + $0x28] sm:$0xf] %vm731_vm11, %v1006_v44  ;;  %v1126_v60 = vpop.f32.mrb[20].mxu0 }
 0x238   :  { %v1009_v5 = vpack.c.bf16 %v1126_v60, %v1126_v60  ;;  %v850_v53 = vpop.f32.mrb[21].mxu0 }
 0x239   :  { %v1008_v25 = vpack.c.bf16 %v850_v53, %v850_v53 }
 0x23a   :  { %993 = vst.msk [vmem:[%s1615_s2 + $0x34] sm:$0xf] %vm731_vm11, %v1009_v5 }
 0x23b   :  { %992 = vst.msk [vmem:[%s1615_s2 + $0x30] sm:$0xf] %vm731_vm11, %v1008_v25  ;;  %v1129_v48 = vpop.f32.mrb[22].mxu0 }
 0x23c   :  { %v1011_v54 = vpack.c.bf16 %v1129_v48, %v1129_v48  ;;  %v860_v57 = vpop.f32.mrb[23].mxu0 }
 0x23d   :  { %v1010_v62 = vpack.c.bf16 %v860_v57, %v860_v57 }
 0x23e   :  { %995 = vst.msk [vmem:[%s1615_s2 + $0x3c] sm:$0xf] %vm731_vm11, %v1011_v54 }
 0x23f   :  { %994 = vst.msk [vmem:[%s1615_s2 + $0x38] sm:$0xf] %vm731_vm11, %v1010_v62 }

</bundles_post_ra>
